<compile_context>
chip_gen: v7x
topology: tpu7x:2x2x1
jax: 0.10.0
libtpu: 0.0.40
codegen_flags: <defaults>
</compile_context>

<pallas_src>
import functools
import math

import jax
import jax.numpy as jnp
from jax.experimental import pallas as pl
from jax.experimental.pallas import tpu as pltpu


def _pick_tile(n, candidates):
    """Largest candidate tile that evenly divides n, else the full dim."""
    for c in candidates:
        if n % c == 0:
            return c
    return n  # TODO(synk): ragged n would need padding/masking for big shapes.


def _pick_row_tile(n):
    """Largest of (512,256,128) dividing n while keeping >= 2 grid steps."""
    best = None
    for c in (512, 256, 128):
        if n % c == 0:
            if best is None:
                best = c
            if n // c >= 2:
                return c
    return best if best is not None else n


# ---------------------------------------------------------------------------
# Row-tiled linear:  y = x @ W + b   (W bf16 [d_in, d_out] VMEM-resident)
# ---------------------------------------------------------------------------
def _linear_kernel(x_ref, w_ref, b_ref, o_ref):
    x = x_ref[...].astype(jnp.bfloat16)            # bf16 MXU operands
    y = jnp.dot(x, w_ref[...], preferred_element_type=jnp.float32)
    o_ref[...] = (y + b_ref[...]).astype(o_ref.dtype)


def _linear(x2d, w_bf16, b_f32, out_dtype):
    n, d_in = x2d.shape
    d_out = w_bf16.shape[1]
    tm = _pick_row_tile(n)
    b2d = b_f32.reshape(1, d_out)
    flops = 2 * n * d_in * d_out
    bytes_accessed = int(x2d.size * x2d.dtype.itemsize
                         + w_bf16.size * 2 + b2d.size * 4
                         + n * d_out * jnp.dtype(out_dtype).itemsize)
    return pl.pallas_call(
        _linear_kernel,
        out_shape=jax.ShapeDtypeStruct((n, d_out), out_dtype),
        grid=(n // tm,),
        in_specs=[
            pl.BlockSpec((tm, d_in), lambda i: (i, 0)),
            pl.BlockSpec((d_in, d_out), lambda i: (0, 0)),   # weights stay resident
            pl.BlockSpec((1, d_out), lambda i: (0, 0)),
        ],
        out_specs=pl.BlockSpec((tm, d_out), lambda i: (i, 0)),
        compiler_params=pltpu.CompilerParams(dimension_semantics=("parallel",)),
        cost_estimate=pl.CostEstimate(
            flops=flops, transcendentals=0, bytes_accessed=bytes_accessed),
    )(x2d, w_bf16, b2d)


# ---------------------------------------------------------------------------
# Flash-style attention with packed heads:
#   blocks [1, tq, d_model], heads looped in-kernel over d_k column slices.
# ---------------------------------------------------------------------------
def _attn_kernel(*refs, nh, d_k, tq, tk, causal, has_mask):
    if has_mask:
        q_ref, k_ref, v_ref, mask_ref, o_ref, m_sc, l_sc, acc_sc = refs
    else:
        q_ref, k_ref, v_ref, o_ref, m_sc, l_sc, acc_sc = refs

    qi = pl.program_id(1)
    ki = pl.program_id(2)

    @pl.when(ki == 0)
    def _():
        m_sc[...] = jnp.full(m_sc.shape, -jnp.inf, m_sc.dtype)
        l_sc[...] = jnp.zeros(l_sc.shape, l_sc.dtype)
        acc_sc[...] = jnp.zeros(acc_sc.shape, acc_sc.dtype)

    def body():
        # mask predicate computed once per (q-tile, kv-tile), shared by all heads
        if has_mask:
            neg = mask_ref[0] == 0                                   # (tq, tk)
        elif causal:
            rows = qi * tq + jax.lax.broadcasted_iota(jnp.int32, (tq, tk), 0)
            cols = ki * tk + jax.lax.broadcasted_iota(jnp.int32, (tq, tk), 1)
            neg = cols > rows
        else:
            neg = None

        for h in range(nh):                       # small static (unrolled) loop
            hs = pl.ds(h * d_k, d_k)
            qh = q_ref[0, :, hs]                  # (tq, d_k) bf16, scale pre-folded
            kh = k_ref[0, :, hs]                  # (tk, d_k) bf16
            vh = v_ref[0, :, hs]                  # (tk, d_k) bf16
            # QK^T as a transposed-RHS contraction (no explicit kt.T relayout)
            s = jax.lax.dot_general(
                qh, kh, (((1,), (1,)), ((), ())),
                preferred_element_type=jnp.float32)                  # (tq, tk)
            if neg is not None:
                # torch: attention_scores.masked_fill_(mask == 0, -1e9)
                s = jnp.where(neg, -1e9, s)

            m_prev = m_sc[h]                                         # (tq, 128)
            m_new = jnp.maximum(m_prev, jnp.max(s, axis=-1, keepdims=True))
            alpha = jnp.exp(m_prev - m_new)                          # (tq, 128)
            p = jnp.exp(s - m_new[:, :1])                            # (tq, tk)
            l_sc[h] = alpha * l_sc[h] + jnp.sum(p, axis=-1, keepdims=True)
            m_sc[h] = m_new
            pv = jnp.dot(p.astype(vh.dtype), vh,
                         preferred_element_type=jnp.float32)         # (tq, d_k)
            acc_sc[:, hs] = alpha[:, :d_k] * acc_sc[:, hs] + pv

    if causal:
        # Skip kv tiles that are entirely above the diagonal (fully masked).
        @pl.when(ki * tk < (qi + 1) * tq)
        def _():
            body()
    else:
        body()

    @pl.when(ki == pl.num_programs(2) - 1)
    def _():
        # TODO(synk): training-mode dropout on the probabilities would go here.
        for h in range(nh):
            hs = pl.ds(h * d_k, d_k)
            l_h = l_sc[h]
            inv = pl.reciprocal(l_h[:, :1], approx=True)             # EUP slot
            acc_sc[:, hs] = acc_sc[:, hs] * inv
        o_ref[0] = acc_sc[...].astype(o_ref.dtype)   # single lane-dense store


def _attention(q3, k3, v3, mask_i8, *, nh, d_k, q_off, k_off, v_off, causal):
    b, sq, _ = q3.shape
    skv = k3.shape[1]
    d_model = nh * d_k
    tq = _pick_tile(sq, (256, 128))
    tk = _pick_tile(skv, (256, 128))

    def q_map(bi, qi, ki):
        return (bi, qi, q_off)

    def make_kv_map(off):
        def kv_map(bi, qi, ki):
            if causal:
                # Clamp skipped kv tiles onto the last useful one so the block
                # index does not change and the K/V DMA is elided.
                ki = jnp.minimum(ki, ((qi + 1) * tq - 1) // tk)
            return (bi, ki, off)
        return kv_map

    in_specs = [
        pl.BlockSpec((1, tq, d_model), q_map),
        pl.BlockSpec((1, tk, d_model), make_kv_map(k_off)),
        pl.BlockSpec((1, tk, d_model), make_kv_map(v_off)),
    ]
    inputs = [q3, k3, v3]
    has_mask = mask_i8 is not None
    if has_mask:
        mb = mask_i8.shape[0]
        in_specs.append(
            pl.BlockSpec((1, tq, tk),
                         lambda bi, qi, ki: ((0 if mb == 1 else bi), qi, ki)))
        inputs.append(mask_i8)

    kernel = functools.partial(_attn_kernel, nh=nh, d_k=d_k, tq=tq, tk=tk,
                               causal=causal, has_mask=has_mask)
    flops = 4 * b * nh * sq * skv * d_k
    bytes_accessed = 2 * b * d_model * (2 * sq + 2 * skv)     # bf16 q,k,v,out
    if has_mask:
        bytes_accessed += b * sq * skv                        # int8 mask

    return pl.pallas_call(
        kernel,
        out_shape=jax.ShapeDtypeStruct((b, sq, d_model), jnp.bfloat16),
        grid=(b, sq // tq, skv // tk),
        in_specs=in_specs,
        out_specs=pl.BlockSpec((1, tq, d_model), lambda bi, qi, ki: (bi, qi, 0)),
        scratch_shapes=[
            pltpu.VMEM((nh, tq, 128), jnp.float32),   # running max (lane-replicated)
            pltpu.VMEM((nh, tq, 128), jnp.float32),   # running denom (lane-replicated)
            pltpu.VMEM((tq, d_model), jnp.float32),   # fp32 accumulator, packed heads
        ],
        compiler_params=pltpu.CompilerParams(
            dimension_semantics=("parallel", "parallel", "arbitrary")),
        cost_estimate=pl.CostEstimate(
            flops=flops, transcendentals=b * nh * sq * skv,
            bytes_accessed=int(bytes_accessed)),
    )(*inputs)


# ---------------------------------------------------------------------------
# Full MultiHeadAttention forward
# ---------------------------------------------------------------------------
def multi_head_attention(q, k, v, mask, wq, bq, wk, bk, wv, bv, wo, bo, *,
                         nh, causal=False):
    b, sq, d_model = q.shape
    skv = k.shape[1]
    assert d_model % nh == 0, "d_model is not divisble by nh"
    d_k = d_model // nh
    scale = 1.0 / math.sqrt(d_k)
    if causal:
        assert sq == skv, "causal fast-path expects self-attention shapes"

    # Fold the 1/sqrt(d_k) score scale into the Q projection (zero runtime cost).
    wq_s = wq * scale
    bq_s = bq * scale

    if q is k and k is v:
        # Fused QKV projection: x is read once, output is a lane-dense
        # [*, 3*d_model] slab that the attention kernel reads via block offsets.
        w_qkv = jnp.concatenate([wq_s, wk, wv], axis=1).astype(jnp.bfloat16)
        b_qkv = jnp.concatenate([bq_s, bk, bv], axis=0).astype(jnp.float32)
        qkv = _linear(q.reshape(b * sq, d_model), w_qkv, b_qkv, jnp.bfloat16)
        qkv = qkv.reshape(b, sq, 3 * d_model)
        q3 = k3 = v3 = qkv
        q_off, k_off, v_off = 0, 1, 2
    else:
        q3 = _linear(q.reshape(b * sq, d_model), wq_s.astype(jnp.bfloat16),
                     bq_s.astype(jnp.float32), jnp.bfloat16).reshape(b, sq, d_model)
        k3 = _linear(k.reshape(b * skv, d_model), wk.astype(jnp.bfloat16),
                     bk.astype(jnp.float32), jnp.bfloat16).reshape(b, skv, d_model)
        v3 = _linear(v.reshape(b * skv, d_model), wv.astype(jnp.bfloat16),
                     bv.astype(jnp.float32), jnp.bfloat16).reshape(b, skv, d_model)
        q_off = k_off = v_off = 0

    if causal or mask is None:
        mask_i8 = None                       # no HBM mask stream at all
    else:
        mask_arr = (mask != 0).astype(jnp.int8)
        if mask_arr.ndim == 2:
            mask_arr = mask_arr[None]
        mask_i8 = mask_arr                   # (1 or B, Sq, Skv) int8

    ctx = _attention(q3, k3, v3, mask_i8, nh=nh, d_k=d_k,
                     q_off=q_off, k_off=k_off, v_off=v_off, causal=causal)

    # ctx is already [B, Sq, nh*d_k] in torch's concat-head order: no transposes.
    out = _linear(ctx.reshape(b * sq, d_model), wo.astype(jnp.bfloat16),
                  bo.astype(jnp.float32), jnp.float32)
    return out.reshape(b, sq, d_model)


if __name__ == "__main__":
    B, S, d_model, nh = 2, 256, 128, 4
    dropout_p = 0.1  # identity at inference
    d_k = d_model // nh

    key = jax.random.PRNGKey(0)
    ks = jax.random.split(key, 14)
    x = jax.random.normal(ks[0], (B, S, d_model), jnp.float32)     # self-attn input
    q2 = jax.random.normal(ks[1], (B, S, d_model), jnp.float32)    # cross-attn style
    k2 = jax.random.normal(ks[2], (B, S, d_model), jnp.float32)
    v2 = jax.random.normal(ks[11], (B, S, d_model), jnp.float32)

    bound = 1.0 / math.sqrt(d_model)

    def init_linear(kw, kb):
        # [in, out] layout == torch nn.Linear weight, transposed
        w = jax.random.uniform(kw, (d_model, d_model), jnp.float32, -bound, bound)
        bb = jax.random.uniform(kb, (d_model,), jnp.float32, -bound, bound)
        return w, bb

    wq, bq = init_linear(ks[3], ks[4])
    wk, bk = init_linear(ks[5], ks[6])
    wv, bv = init_linear(ks[7], ks[8])
    wo, bo = init_linear(ks[9], ks[10])

    causal_mask = jnp.tril(jnp.ones((S, S), jnp.int32))[None, :, :]

    def ref_forward(q, k, v, mask):
        hp = jax.lax.Precision.HIGHEST
        sq, skv = q.shape[1], k.shape[1]
        Qr = (jnp.dot(q, wq, precision=hp) + bq).reshape(B, sq, nh, d_k).transpose(0, 2, 1, 3)
        Kr = (jnp.dot(k, wk, precision=hp) + bk).reshape(B, skv, nh, d_k).transpose(0, 2, 1, 3)
        Vr = (jnp.dot(v, wv, precision=hp) + bv).reshape(B, skv, nh, d_k).transpose(0, 2, 1, 3)
        scores = jnp.einsum("bhqd,bhkd->bhqk", Qr, Kr, precision=hp) / math.sqrt(d_k)
        if mask is not None:
            scores = jnp.where(mask[:, None, :, :] == 0, -1e9, scores)
        probs = jax.nn.softmax(scores, axis=-1)
        ctx = jnp.einsum("bhqk,bhkd->bhqd", probs, Vr, precision=hp)
        ctx = ctx.transpose(0, 2, 1, 3).reshape(B, sq, d_model)
        return jnp.dot(ctx, wo, precision=hp) + bo

    tol = dict(atol=2e-2, rtol=2e-2)   # bf16 MXU operands with fp32 accumulation

    # 1) self-attention: fused QKV projection + in-kernel causal mask (no HBM mask)
    out1 = multi_head_attention(x, x, x, None, wq, bq, wk, bk, wv, bv, wo, bo,
                                nh=nh, causal=True)
    out1 = jax.block_until_ready(out1)
    ref1 = ref_forward(x, x, x, causal_mask)
    assert out1.shape == (B, S, d_model)
    err1 = float(jnp.max(jnp.abs(out1 - ref1)))
    assert jnp.allclose(out1, ref1, **tol), f"causal path max_err={err1}"

    # 2) distinct q/k/v with an explicit HBM mask (int8 mask path)
    out2 = multi_head_attention(q2, k2, v2, causal_mask,
                                wq, bq, wk, bk, wv, bv, wo, bo, nh=nh)
    out2 = jax.block_until_ready(out2)
    ref2 = ref_forward(q2, k2, v2, causal_mask)
    err2 = float(jnp.max(jnp.abs(out2 - ref2)))
    assert jnp.allclose(out2, ref2, **tol), f"mask path max_err={err2}"

    # 3) mask=None path (no mask input materialized or DMA'd)
    out3 = multi_head_attention(q2, k2, v2, None,
                                wq, bq, wk, bk, wv, bv, wo, bo, nh=nh)
    out3 = jax.block_until_ready(out3)
    ref3 = ref_forward(q2, k2, v2, None)
    err3 = float(jnp.max(jnp.abs(out3 - ref3)))
    assert jnp.allclose(out3, ref3, **tol), f"no-mask path max_err={err3}"

    print("KERNEL_OK")
</pallas_src>

<mosaic_0001>
module attributes {stable_mosaic.version = 11 : i64} {
  func.func @_linear_kernel(%arg0: i32, %arg1: memref<256x128xf32, #tpu.memory_space<vmem>>, %arg2: memref<128x384xbf16, #tpu.memory_space<vmem>>, %arg3: memref<1x384xf32, #tpu.memory_space<vmem>>, %arg4: memref<256x384xbf16, #tpu.memory_space<vmem>>) attributes {dimension_semantics = [#tpu.dimension_semantics<parallel>], iteration_bounds = array<i64: 2>, scalar_prefetch = 0 : i64, scratch_operands = 0 : i64, tpu.core_type = #tpu.core_type<tc>, window_params = [{transform_indices = @transform_0, window_bounds = array<i64: 256, 128>}, {pipeline_mode = #tpu.pipeline_mode<synchronous>, transform_indices = @transform_1, window_bounds = array<i64: 128, 384>}, {pipeline_mode = #tpu.pipeline_mode<synchronous>, transform_indices = @transform_2, window_bounds = array<i64: 1, 384>}, {transform_indices = @transform_3, window_bounds = array<i64: 256, 384>}]} {
    %c0 = arith.constant 0 : index
    %c0_0 = arith.constant 0 : index
    %0 = vector.load %arg1[%c0, %c0_0] : memref<256x128xf32, #tpu.memory_space<vmem>>, vector<256x128xf32>
    %1 = arith.truncf %0 : vector<256x128xf32> to vector<256x128xbf16>
    %c0_1 = arith.constant 0 : index
    %c0_2 = arith.constant 0 : index
    %2 = vector.load %arg2[%c0_1, %c0_2] : memref<128x384xbf16, #tpu.memory_space<vmem>>, vector<128x384xbf16>
    %cst = arith.constant dense<0.000000e+00> : vector<256x384xf32>
    %3 = tpu.matmul %1, %2, %cst {dimension_numbers = #tpu.dot_dimension_numbers<[1], [0], [0], [1], [0, 0, 1, 1], [], []>} : vector<256x128xbf16>, vector<128x384xbf16>, vector<256x384xf32> -> vector<256x384xf32>
    %c0_3 = arith.constant 0 : index
    %c0_4 = arith.constant 0 : index
    %4 = vector.load %arg3[%c0_3, %c0_4] : memref<1x384xf32, #tpu.memory_space<vmem>>, vector<1x384xf32>
    %5 = vector.broadcast %4 : vector<1x384xf32> to vector<256x384xf32>
    %6 = arith.addf %3, %5 : vector<256x384xf32>
    %7 = arith.truncf %6 : vector<256x384xf32> to vector<256x384xbf16>
    %c0_5 = arith.constant 0 : index
    %c0_6 = arith.constant 0 : index
    %8 = vector.load %arg4[%c0_5, %c0_6] : memref<256x384xbf16, #tpu.memory_space<vmem>>, vector<256x384xbf16>
    tpu.vector_store %arg4[%c0_5, %c0_6], %7 {strides = array<i32>} : memref<256x384xbf16, #tpu.memory_space<vmem>>, vector<256x384xbf16>,
    return
  }
  func.func @transform_0(%arg0: i32) -> (i32, i32) {
    %c0_i32 = arith.constant 0 : i32
    %c0_i32_0 = arith.constant 0 : i32
    return %arg0, %c0_i32 : i32, i32
  }
  func.func @transform_1(%arg0: i32) -> (i32, i32) {
    %c0_i32 = arith.constant 0 : i32
    %c0_i32_0 = arith.constant 0 : i32
    %c0_i32_1 = arith.constant 0 : i32
    return %c0_i32, %c0_i32_0 : i32, i32
  }
  func.func @transform_2(%arg0: i32) -> (i32, i32) {
    %c0_i32 = arith.constant 0 : i32
    %c0_i32_0 = arith.constant 0 : i32
    %c0_i32_1 = arith.constant 0 : i32
    return %c0_i32, %c0_i32_0 : i32, i32
  }
  func.func @transform_3(%arg0: i32) -> (i32, i32) {
    %c0_i32 = arith.constant 0 : i32
    %c0_i32_0 = arith.constant 0 : i32
    return %arg0, %c0_i32 : i32, i32
  }
}

</mosaic_0001>

<bundles_post_ra>
// kernel: tpu_custom_call.1
= control target key start
LH: loop header
LB: loop body
LE: loop exit
PB: predicated region body
PF: predicated region fallthrough
CT: control target
= control target key end

     0   :  { %8 = vsyncpa [#allocation3], 0  ;;  %s2232_s0 = inlined_call_operand.hbm [shape: f32[512,128], index: 0, kind: input, shape index: {}]   ;;  %s2233_s1 = inlined_call_operand.hbm [shape: bf16[128,384], index: 1, kind: input, shape index: {}]   ;;  %s2234_s2 = inlined_call_operand.vmem [shape: f32[1,384], index: 2, kind: input, shape index: {}]   ;;  %s2235_s3 = inlined_call_operand.hbm [shape: bf16[512,384], index: 3, kind: output, shape index: {}]  }
   0x1   :  { %10 = vsyncpa [#allocation3 + $0x1], 0 }
   0x2   :  { %11 = vsyncpa [#allocation6], 0 }
   0x3   :  { %12 = vsyncpa [#allocation4], 0 }
   0x4   :  { %14 = vsyncpa [#allocation4 + $0x1], 0  ;;  %s1782_s12 = smov 0   ;;  %s1784_s13 = smov 0  }
   0x5   :  { %s1786_s14 = smov 0   ;;  %s1788_s15 = smov 0  }
   0x6 LB: > { %s1803_s16 = sadd.s32 4294967295, %s1750_s15   ;;  %s1268_s17 = sadd.s32 4294967294, %s1750_s15   ;;  %s1750_s15 = sphi %s1788_s15, %s2255_s15   ;;  %s1746_s14 = sphi %s1786_s14, %s2254_s14   ;;  %s1742_s13 = sphi %s1784_s13, %s2253_s13   ;;  %s1738_s12 = sphi %s1782_s12, %s2252_s12  }
   0x7   : > { %p40_p0 = scmp.ne.s32.totalorder %s1742_s13, %s1738_s12  ;;  %p2236_p1 = scmp.eq.s32.totalorder %s1803_s16, 0 }
   0x8   : > { %p112_p3 = scmp.eq.s32.totalorder %s1268_s17, 1  ;;  %p1269_p5 = scmp.ge.s32.totalorder %s1750_s15, 1 }
   0x9   : > { %p1812_p4 = por %p2236_p1, %p40_p0  ;;  %p119_p7 = scmp.lt.s32.totalorder %s1750_s15, 3 }
   0xa   : > { %p1817_p6 = por %p112_p3, %p40_p0  ;;  %s1752_s21 = smov [#allocation5]  }
   0xb   : > { %s2239_s18 = scalar_select %p1812_p4, 1, 0 }
   0xc   : > { %s2240_s19 = scalar_select %p1817_p6, 1, 0 }
   0xd   : > { %p1822_p8 = pnand %p1269_p5, %p119_p7  ;;  %s131_s22 = sshll.u32 %s1752_s21, 4  ;;  %s1826_s22 = int_to_ptr.vmem [resolvable:$true] %s131_s22 }
   0xe   : > { %s1838_s24 = sadd.s32 1, %s1750_s15   ;;  %s27_s25 = sadd.s32 1, %s1746_s14 }
   0xf   : > { %s2241_s20 = scalar_select %p1822_p8, 1, 0 }
  0x10   : > { %p1534_p9 = pneg %p1822_p8  ;;  %s24_s26 = ssub.s32 %s1750_s15, %s1838_s24 }
  0x11   : > { %s1622_s29 = scalar_lea.hbm %s2233_s1, 3072 }
  0x12   : > { %p1833_p11 = pnand %p1534_p9, %p2236_p1  ;;  %p1623_p12 = scmp.ne.s32.totalorder %s2233_s1, %s1622_s29 }
  0x13   : > { %p1629_p5 = scmp.lt.u32.totalorder %s1622_s29, %s2233_s1 }
  0x14   : > { %p1624_p13 = pneg %p1833_p11 }
  0x16   : > { %p1625_p0 = pnand %p1624_p13, %p1623_p12 }
  0x18   : > { %p1626_p3 = pneg %p1625_p0 }
  0x1a   : > { %p1631_p7 = pnand %p1629_p5, %p1626_p3 }
  0x1c   : > { %1634 = shalt.err (!%p1631_p7)
}
  0x1d   : > { %s1635_s7 = scalar_lea.vmem %s1826_s22, 3072  ;;  %p1643_p2 = scmp.lt.s32.totalorder %s1826_s22, %s1826_s22 }
  0x1e   : > { %p1636_p9 = scmp.ne.s32.totalorder %s1826_s22, %s1635_s7  ;;  %p1644_p6 = scmp.lt.s32.totalorder %s1635_s7, %s1635_s7 }
  0x20   : > { %p1638_p10 = pnand %p1636_p9, %p1624_p13  ;;  %p1645_p4 = por %p1644_p6, %p1643_p2 }
  0x22   : > { %p1639_p1 = pneg %p1638_p10 }
  0x24   : > { %p1646_p8 = pnand %p1645_p4, %p1639_p1 }
  0x26   : > { %1649 = shalt.err (!%p1646_p8)
}
  0x27   : > { %s1753_s8 = smov 192   ;;  %s1754_s9 = smov 12  }
  0x28   : > { %1537 = dma.hbm_to_vmem [thread:$0]  (!%p1833_p11), %s2233_s1, 3072, %s1826_s22, [#allocation6], %s1753_s8, %s1753_s8, %s1754_s9  }
  0x29   : > { %p25_p2 = scmp.eq.s32.totalorder %s24_s26, 0  ;;  %p34_p1 = scmp.ne.s32.totalorder %s1746_s14, %s1742_s13 }
  0x2a   : > { %p35_p4 = scmp.eq.s32.totalorder %s1750_s15, 0  ;;  %p1547_p6 = scmp.lt.s32.totalorder %s1750_s15, 2 }
  0x2b   : > { %s1869_s17 = scalar_select %p25_p2, %s1746_s14, %s27_s25  }
  0x2c   : > { %p36_p8 = por %p35_p4, %p34_p1  ;;  %p2243_p10 = scmp.eq.s32.totalorder %s1803_s16, 1 }
  0x2d   : > { %s148_s27 = sand.u32 1, %s1746_s14   ;;  %s1371_s28 = sshll.u32 %s1750_s15, 12 }
  0x2e   : > { %p1873_p12 = por %p2243_p10, %p34_p1  ;;  %s1272_s29 = sshll.u32 %s148_s27, 8 }
  0x2f   : > { %s1882_s4 = scalar_lea.hbm %s2232_s0, %s1371_s28  ;;  %s152_s22 = scalar_lea.vmem [#allocation2], %s1272_s29 }
  0x30   : > { %s159_s25 = sshll.u32 %s152_s22, 4  ;;  %p1884_p11 = pnand %p1547_p6, %p36_p8  ;;  %s1888_s25 = int_to_ptr.vmem [resolvable:$true] %s159_s25 }
  0x31   : > { %s1890_s5 = scalar_lea.sflag [#allocation3], %s148_s27  ;;  %s1650_s6 = scalar_lea.hbm %s1882_s4, 4096 }
  0x32   : > { %p1651_p13 = scmp.ne.s32.totalorder %s1882_s4, %s1650_s6  ;;  %p1652_p0 = pneg %p1884_p11 }
  0x33   : > { %s1655_s9 = scalar_lea.hbm %s2232_s0, 8192  ;;  %p1656_p7 = scmp.lt.u32.totalorder %s1882_s4, %s2232_s0 }
  0x34   : > { %p1653_p3 = pnand %p1652_p0, %p1651_p13  ;;  %p1657_p9 = scmp.lt.u32.totalorder %s1655_s9, %s1650_s6 }
  0x35   : > { %p1659_p1 = scmp.lt.u32.totalorder %s1650_s6, %s1882_s4 }
  0x36   : > { %p1654_p5 = pneg %p1653_p3  ;;  %p1658_p2 = por %p1657_p9, %p1656_p7 }
  0x38   : > { %p1660_p4 = por %p1659_p1, %p1658_p2 }
  0x3a   : > { %p1661_p6 = pnand %p1660_p4, %p1654_p5 }
  0x3c   : > { %1664 = shalt.err (!%p1661_p6)
}
  0x3d   : > { %s1665_s27 = scalar_lea.vmem %s1888_s25, 4096  ;;  %s1755_s28 = smov [#allocation2]  }
  0x3e   : > { %p1666_p8 = scmp.ne.s32.totalorder %s1888_s25, %s1665_s27  ;;  %s1670_s29 = sshll.u32 %s1755_s28, 4  ;;  %s1671_s29 = int_to_ptr.vmem [resolvable:$false] %s1670_s29 }
  0x3f   : > { %s1672_s23 = scalar_lea.vmem %s1671_s29, 8192  ;;  %p1673_p3 = scmp.lt.s32.totalorder %s1888_s25, %s1671_s29 }
  0x40   : > { %p1668_p10 = pnand %p1666_p8, %p1652_p0  ;;  %p1674_p7 = scmp.lt.s32.totalorder %s1672_s23, %s1665_s27 }
  0x42   : > { %p1669_p13 = pneg %p1668_p10  ;;  %p1675_p9 = por %p1674_p7, %p1673_p3 }
  0x44   : > { %p1676_p2 = pnand %p1675_p9, %p1669_p13 }
  0x46   : > { %1679 = shalt.err (!%p1676_p2)
}
  0x47   : > { %s1756_s30 = smov 128   ;;  %s1757_s22 = smov 8  }
  0x48   : > { %1541 = dma.hbm_to_vmem [thread:$0]  (!%p1884_p11), %s1882_s4, 4096, %s1888_s25, %s1890_s5, %s1756_s30, %s1756_s30, %s1757_s22  }
  0x49   : > { %p2246_p0 = scmp.ne.s32.totalorder %s2241_s20, 0 }
  0x4a   : > { %s1921_s6 = sand.u32 (!%p2246_p0), 1, %s1742_s13   ;;  %p2247_p5 = scmp.ne.s32.totalorder (!%p2246_p0), %s2239_s18, 0 }
  0x4b   : > { %171 = sbr.rel (%p2246_p0) target bundleno = 442 (0x1ba), region = 32  ;;  %s1276_s7 = sshll.u32 (!%p2246_p0), %s1921_s6, 8 }
  0x4c   : > { %s174_s8 = scalar_lea.sflag (!%p2246_p0), [#allocation3], %s1921_s6  ;;  %s1925_s9 = scalar_lea.vmem (!%p2246_p0), [#allocation2], %s1276_s7 }
  0x52   : > { %1725 = dma.done.wait (%p2247_p5), %s174_s8, 4096  }
  0x53   : > { %1727 = vsyncadd (%p2247_p5), %s174_s8, 4294963200  ;;  %p2248_p11 = scmp.eq.s32.totalorder %s1803_s16, 0 }
  0x55   : > { %1729 = dma.done.wait (%p2248_p11), [#allocation6], 3072   ;;  %p2249_p1 = pmov %p2248_p11 }
  0x56   : > { %v1758_v0 = vmov 0   ;;  %v1590_v1 = vld [vmem:[#allocation5 + $0x4] ss:$12 sps:$4 sm:$0xff]   ;;  %v1592_v2 = vld [vmem:[#allocation5] ss:$12 sps:$4 sm:$0xff]   ;;  %v210_v26 = vld [vmem:[%s1925_s9 + $0x18] sm:$0xff] }
  0x57   : > { %1731 = vsyncadd (%p2249_p1), [#allocation6], 4294964224  ;;  %464 = vmatprep.mubr.bf16.mxu0 %v1758_v0  ;;  %584 = vmatprep.mubr.bf16.mxu1 %v1758_v0  ;;  %v1593_v3 = vld [vmem:[#allocation5 + $0x1c] ss:$12 sps:$4 sm:$0xff]   ;;  %v1595_v4 = vld [vmem:[#allocation5 + $0x18] ss:$12 sps:$4 sm:$0xff]  }
  0x58   : > { %432 = vmatprep.subr.bf16.mxu0 %v1590_v1  ;;  %1508 = vmatprep.subr.bf16.mxu1 %v1590_v1  ;;  %v1596_v5 = vld [vmem:[#allocation5 + $0x34] ss:$12 sps:$4 sm:$0xff]   ;;  %v1598_v6 = vld [vmem:[#allocation5 + $0x30] ss:$12 sps:$4 sm:$0xff]   ;;  %v1599_v7 = vld [vmem:[#allocation5 + $0x4c] ss:$12 sps:$4 sm:$0xff]  }
  0x59   : > { %433 = vmatpush1.bf16.msra.mxu0 %v1592_v2  ;;  %1516 = vmatpush1.bf16.msra.mxu1 %v1592_v2  ;;  %v1601_v8 = vld [vmem:[#allocation5 + $0x48] ss:$12 sps:$4 sm:$0xff]   ;;  %v1602_v9 = vld [vmem:[#allocation5 + $0x64] ss:$12 sps:$4 sm:$0xff]   ;;  %v1604_v10 = vld [vmem:[#allocation5 + $0x60] ss:$12 sps:$4 sm:$0xff]  }
  0x5a   : > { %434 = vmatprep.subr.bf16.mxu0 %v1593_v3  ;;  %1509 = vmatprep.subr.bf16.mxu1 %v1593_v3  ;;  %v1605_v11 = vld [vmem:[#allocation5 + $0x7c] ss:$12 sps:$4 sm:$0xff]   ;;  %v1607_v12 = vld [vmem:[#allocation5 + $0x78] ss:$12 sps:$4 sm:$0xff]   ;;  %v1608_v13 = vld [vmem:[#allocation5 + $0x94] ss:$12 sps:$4 sm:$0xff]  }
  0x5b   : > { %v1610_v14 = vld [vmem:[#allocation5 + $0x90] ss:$12 sps:$4 sm:$0xff]   ;;  %v1611_v15 = vld [vmem:[#allocation5 + $0xac] ss:$12 sps:$4 sm:$0xff]   ;;  %v1613_v16 = vld [vmem:[#allocation5 + $0xa8] ss:$12 sps:$4 sm:$0xff]  }
  0x5c   : > { %v207_v17 = vld [vmem:[%s1925_s9] sm:$0xff]  ;;  %v208_v18 = vld [vmem:[%s1925_s9 + $0x8] sm:$0xff]  ;;  %v209_v25 = vld [vmem:[%s1925_s9 + $0x10] sm:$0xff]  ;;  %s1524_s4 = smul.u32 384, %s1921_s6  ;;  %s1171_s27 = scalar_lea.sflag [#allocation4], %s1921_s6 }
  0x5d   : > { %435 = vmatpush1.bf16.msra.mxu0 %v1595_v4  ;;  %1517 = vmatpush1.bf16.msra.mxu1 %v1595_v4  ;;  %v231_v19 = vld [vmem:[%s1925_s9 + $0xc0] sm:$0xff]  ;;  %v232_v20 = vld [vmem:[%s1925_s9 + $0xc8] sm:$0xff]  ;;  %v239_v22 = vpack.c.bf16 %v208_v18, %v207_v17  ;;  %v233_v27 = vld [vmem:[%s1925_s9 + $0xd0] sm:$0xff]  ;;  %v240_v30 = vpack.c.bf16 %v210_v26, %v209_v25  ;;  %s1525_s26 = smul.u32 6144, %s1803_s16  ;;  %s1759_s29 = smov [#allocation7]  }
  0x5e   : > { %436 = vmatprep.subr.bf16.mxu0 %v1596_v5  ;;  %1510 = vmatprep.subr.bf16.mxu1 %v1596_v5  ;;  %v1614_v21 = vld [vmem:[#allocation5 + $0x8] ss:$12 sps:$4 sm:$0xff]   ;;  %v1941_v23 = vpack.c.bf16 %v232_v20, %v231_v19  ;;  %v1615_v24 = vld [vmem:[#allocation5 + $0x20] ss:$12 sps:$4 sm:$0xff]   ;;  %v234_v28 = vld [vmem:[%s1925_s9 + $0xd8] sm:$0xff]  ;;  %s2023_s25 = scalar_lea.vmem [#allocation7], %s1524_s4 }
  0x5f   : > { %v1616_v29 = vld [vmem:[#allocation5 + $0x38] ss:$12 sps:$4 sm:$0xff]   ;;  %v1950_v31 = vpack.c.bf16 %v234_v28, %v233_v27  ;;  %v1617_v32 = vld [vmem:[#allocation5 + $0x50] ss:$12 sps:$4 sm:$0xff]   ;;  %v212_v34 = vld [vmem:[%s1925_s9 + $0x28] sm:$0xff]  ;;  %s1185_s5 = sshll.u32 %s2023_s25, 4  ;;  %s2181_s11 = scalar_lea.hbm %s2235_s3, %s1525_s26  ;;  %s2183_s5 = int_to_ptr.vmem [resolvable:$true] %s1185_s5 }
  0x60   : > { %v211_v33 = vld [vmem:[%s1925_s9 + $0x20] sm:$0xff]  ;;  %v236_v36 = vld [vmem:[%s1925_s9 + $0xe8] sm:$0xff]  ;;  %v213_v41 = vld [vmem:[%s1925_s9 + $0x30] sm:$0xff]  ;;  %s1680_s28 = scalar_lea.vmem %s2183_s5, 6144  ;;  %s1684_s23 = sshll.u32 %s1759_s29, 4  ;;  %s1685_s23 = int_to_ptr.vmem [resolvable:$false] %s1684_s23 }
  0x61   : > { %437 = vmatpush1.bf16.msra.mxu0 %v1598_v6  ;;  %1518 = vmatpush1.bf16.msra.mxu1 %v1598_v6  ;;  %v235_v35 = vld [vmem:[%s1925_s9 + $0xe0] sm:$0xff]  ;;  %v1618_v37 = vld [vmem:[#allocation5 + $0x68] ss:$12 sps:$4 sm:$0xff]   ;;  %v241_v38 = vpack.c.bf16 %v212_v34, %v211_v33  ;;  %v214_v42 = vld [vmem:[%s1925_s9 + $0x38] sm:$0xff]  ;;  %p1681_p4 = scmp.ne.s32.totalorder %s2183_s5, %s1680_s28  ;;  %s1686_s30 = scalar_lea.vmem %s1685_s23, 12288 }
  0x62   : > { %438 = vmatprep.subr.bf16.mxu0 %v1599_v7  ;;  %1511 = vmatprep.subr.bf16.mxu1 %v1599_v7  ;;  %v1959_v39 = vpack.c.bf16 %v236_v36, %v235_v35  ;;  %v1619_v40 = vld [vmem:[#allocation5 + $0x80] ss:$12 sps:$4 sm:$0xff]   ;;  %v237_v43 = vld [vmem:[%s1925_s9 + $0xf0] sm:$0xff]  ;;  %v238_v44 = vld [vmem:[%s1925_s9 + $0xf8] sm:$0xff]  ;;  %v242_v46 = vpack.c.bf16 %v214_v42, %v213_v41  ;;  %p1687_p10 = scmp.lt.s32.totalorder %s2183_s5, %s1685_s23  ;;  %p1688_p13 = scmp.lt.s32.totalorder %s1686_s30, %s1680_s28 }
  0x63   : > { %v1620_v45 = vld [vmem:[#allocation5 + $0x98] ss:$12 sps:$4 sm:$0xff]   ;;  %v1968_v47 = vpack.c.bf16 %v238_v44, %v237_v43  ;;  %v1621_v48 = vld [vmem:[#allocation5 + $0xb0] ss:$12 sps:$4 sm:$0xff]   ;;  %v216_v50 = vld [vmem:[%s1925_s9 + $0x48] sm:$0xff]  ;;  %p1682_p6 = pnand %p1681_p4, %p1873_p12 }
  0x64   : > { %v215_v49 = vld [vmem:[%s1925_s9 + $0x40] sm:$0xff]  ;;  %v217_v52 = vld [vmem:[%s1925_s9 + $0x50] sm:$0xff]  ;;  %v218_v53 = vld [vmem:[%s1925_s9 + $0x58] sm:$0xff]  ;;  %p1689_p3 = por %p1688_p13, %p1687_p10 }
  0x65   : > { %439 = vmatpush1.bf16.msra.mxu0 %v1601_v8  ;;  %1519 = vmatpush1.bf16.msra.mxu1 %v1601_v8  ;;  %v243_v51 = vpack.c.bf16 %v216_v50, %v215_v49  ;;  %v244_v54 = vpack.c.bf16 %v218_v53, %v217_v52  ;;  %v219_v55 = vld [vmem:[%s1925_s9 + $0x60] sm:$0xff]  ;;  %v220_v56 = vld [vmem:[%s1925_s9 + $0x68] sm:$0xff]  ;;  %v221_v58 = vld [vmem:[%s1925_s9 + $0x70] sm:$0xff]  ;;  %p1683_p8 = pneg %p1682_p6 }
  0x66   : > { %440 = vmatprep.subr.bf16.mxu0 %v1602_v9  ;;  %1512 = vmatprep.subr.bf16.mxu1 %v1602_v9  ;;  %v245_v57 = vpack.c.bf16 %v220_v56, %v219_v55  ;;  %v222_v59 = vld [vmem:[%s1925_s9 + $0x78] sm:$0xff]  ;;  %v223_v60 = vld [vmem:[%s1925_s9 + $0x80] sm:$0xff]  ;;  %v224_v61 = vld [vmem:[%s1925_s9 + $0x88] sm:$0xff] }
  0x67   : > { %v246_v62 = vpack.c.bf16 %v222_v59, %v221_v58  ;;  %v247_v63 = vpack.c.bf16 %v224_v61, %v223_v60  ;;  %v225_v1 = vld [vmem:[%s1925_s9 + $0x90] sm:$0xff]  ;;  %v226_v2 = vld [vmem:[%s1925_s9 + $0x98] sm:$0xff]  ;;  %v227_v3 = vld [vmem:[%s1925_s9 + $0xa0] sm:$0xff]  ;;  %p1690_p7 = pnand %p1689_p3, %p1683_p8 }
  0x68   : > { %v228_v4 = vld [vmem:[%s1925_s9 + $0xa8] sm:$0xff]  ;;  %v248_v5 = vpack.c.bf16 %v226_v2, %v225_v1  ;;  %v229_v7 = vld [vmem:[%s1925_s9 + $0xb0] sm:$0xff]  ;;  %v230_v8 = vld [vmem:[%s1925_s9 + $0xb8] sm:$0xff] }
  0x69   : > { %441 = vmatpush1.bf16.msra.mxu0 %v1604_v10  ;;  %1520 = vmatpush1.bf16.msra.mxu1 %v1604_v10  ;;  %v249_v6 = vpack.c.bf16 %v228_v4, %v227_v3  ;;  %v250_v9 = vpack.c.bf16 %v230_v8, %v229_v7  ;;  %v289_v10 = vlaneseq }
  0x6a   : > { %442 = vmatprep.subr.bf16.mxu0 %v1605_v11  ;;  %1513 = vmatprep.subr.bf16.mxu1 %v1605_v11 }
  0x6b   : > { %v1999_v11 = vshrl.u32 %v289_v10, 7 }
  0x6d   : > { %443 = vmatpush1.bf16.msra.mxu0 %v1607_v12  ;;  %1521 = vmatpush1.bf16.msra.mxu1 %v1607_v12  ;;  %v291_v12 = vsub.s32 0, %v1999_v11 }
  0x6e   : > { %444 = vmatprep.subr.bf16.mxu0 %v1608_v13  ;;  %1514 = vmatprep.subr.bf16.mxu1 %v1608_v13  ;;  %v2005_v13 = vld [vmem:[%s2234_s2] sm:$0x7] }
  0x71   : > { %445 = vmatpush1.bf16.msra.mxu0 %v1610_v14  ;;  %1522 = vmatpush1.bf16.msra.mxu1 %v1610_v14  ;;  %v295_v14 = vsub.s32 1, %v1999_v11 }
  0x72   : > { %446 = vmatprep.subr.bf16.mxu0 %v1611_v15  ;;  %1515 = vmatprep.subr.bf16.mxu1 %v1611_v15  ;;  %v2009_v15 = vrot.slane %v2005_v13, %v291_v12 }
  0x75   : > { %447 = vmatpush1.bf16.msra.mxu0 %v1613_v16  ;;  %1523 = vmatpush1.bf16.msra.mxu1 %v1613_v16 }
  0x76   : > { %1460 = vmatprep.subr.bf16.mxu1 %v1614_v21 }
  0x78   : > { %465 = vmatmul.mubr.bf16.vlgmr.msra.gmra.mrb[0].mxu0 %v239_v22  ;;  %585 = vmatmul.mubr.bf16.vlgmr.msra.gmra.mrb[0].mxu1 %v1941_v23 }
  0x79   : > { %1461 = vmatpush3.bf16.msra.mxu1 %v1614_v21  ;;  %474 = vmatprep.mubr.bf16.mxu0 %v1758_v0 }
  0x7a   : > { %1462 = vmatprep.subr.bf16.mxu1 %v1615_v24  ;;  %594 = vmatprep.mubr.bf16.mxu1 %v1758_v0 }
  0x7d   : > { %1463 = vmatpush3.bf16.msra.mxu1 %v1615_v24 }
  0x7e   : > { %1464 = vmatprep.subr.bf16.mxu1 %v1616_v29 }
  0x80   : > { %475 = vmatmul.mubr.bf16.gmra.mrb[4].mxu0 %v240_v30  ;;  %595 = vmatmul.mubr.bf16.gmra.mrb[4].mxu1 %v1950_v31 }
  0x81   : > { %1465 = vmatpush3.bf16.msra.mxu1 %v1616_v29  ;;  %484 = vmatprep.mubr.bf16.mxu0 %v1758_v0 }
  0x82   : > { %1466 = vmatprep.subr.bf16.mxu1 %v1617_v32  ;;  %604 = vmatprep.mubr.bf16.mxu1 %v1758_v0 }
  0x85   : > { %1467 = vmatpush3.bf16.msra.mxu1 %v1617_v32 }
  0x86   : > { %1468 = vmatprep.subr.bf16.mxu1 %v1618_v37 }
  0x88   : > { %485 = vmatmul.mubr.bf16.gmra.mrb[8].mxu0 %v241_v38  ;;  %605 = vmatmul.mubr.bf16.gmra.mrb[8].mxu1 %v1959_v39 }
  0x89   : > { %1469 = vmatpush3.bf16.msra.mxu1 %v1618_v37  ;;  %494 = vmatprep.mubr.bf16.mxu0 %v1758_v0 }
  0x8a   : > { %1470 = vmatprep.subr.bf16.mxu1 %v1619_v40  ;;  %614 = vmatprep.mubr.bf16.mxu1 %v1758_v0 }
  0x8d   : > { %1471 = vmatpush3.bf16.msra.mxu1 %v1619_v40 }
  0x8e   : > { %1472 = vmatprep.subr.bf16.mxu1 %v1620_v45 }
  0x90   : > { %495 = vmatmul.mubr.bf16.gmra.mrb[12].mxu0 %v242_v46  ;;  %615 = vmatmul.mubr.bf16.gmra.mrb[12].mxu1 %v1968_v47 }
  0x91   : > { %1473 = vmatpush3.bf16.msra.mxu1 %v1620_v45  ;;  %504 = vmatprep.mubr.bf16.mxu0 %v1758_v0 }
  0x92   : > { %1474 = vmatprep.subr.bf16.mxu1 %v1621_v48  ;;  %1476 = vmatprep.mubr.bf16.mxu1 %v239_v22 }
  0x95   : > { %1475 = vmatpush3.bf16.msra.mxu1 %v1621_v48 }
  0x98   : > { %505 = vmatmul.mubr.bf16.gmra.mrb[16].mxu0 %v243_v51  ;;  %1477 = vmatmul.mubr.bf16.vlgmr.msra.gmra.mrb[16].mxu1 %v240_v30 }
  0x99   : > { %514 = vmatprep.mubr.bf16.mxu0 %v1758_v0  ;;  %1480 = vmatprep.mubr.bf16.mxu1 %v241_v38 }
  0xa0   : > { %515 = vmatmul.mubr.bf16.gmra.mrb[20].mxu0 %v244_v54  ;;  %1481 = vmatmul.mubr.bf16.gmra.mrb[20].mxu1 %v242_v46 }
  0xa1   : > { %524 = vmatprep.mubr.bf16.mxu0 %v1758_v0  ;;  %1484 = vmatprep.mubr.bf16.mxu1 %v243_v51 }
  0xa8   : > { %525 = vmatmul.mubr.bf16.gmra.mrb[24].mxu0 %v245_v57  ;;  %1485 = vmatmul.mubr.bf16.gmra.mrb[24].mxu1 %v244_v54 }
  0xa9   : > { %534 = vmatprep.mubr.bf16.mxu0 %v1758_v0  ;;  %1488 = vmatprep.mubr.bf16.mxu1 %v245_v57 }
  0xb0   : > { %535 = vmatmul.mubr.bf16.gmra.mrb[28].mxu0 %v246_v62  ;;  %1489 = vmatmul.mubr.bf16.gmra.mrb[28].mxu1 %v246_v62 }
  0xb1   : > { %544 = vmatprep.mubr.bf16.mxu0 %v1758_v0  ;;  %1492 = vmatprep.mubr.bf16.mxu1 %v247_v63 }
  0xb8   : > { %545 = vmatmul.mubr.bf16.gmra.mrb[32].mxu0 %v247_v63  ;;  %1493 = vmatmul.mubr.bf16.gmra.mrb[32].mxu1 %v248_v5 }
  0xb9   : > { %554 = vmatprep.mubr.bf16.mxu0 %v1758_v0  ;;  %1496 = vmatprep.mubr.bf16.mxu1 %v249_v6 }
  0xc0   : > { %555 = vmatmul.mubr.bf16.gmra.mrb[36].mxu0 %v248_v5  ;;  %1497 = vmatmul.mubr.bf16.gmra.mrb[36].mxu1 %v250_v9 }
  0xc1   : > { %564 = vmatprep.mubr.bf16.mxu0 %v1758_v0  ;;  %1500 = vmatprep.mubr.bf16.mxu1 %v1941_v23 }
  0xc8   : > { %565 = vmatmul.mubr.bf16.gmra.mrb[40].mxu0 %v249_v6  ;;  %1501 = vmatmul.mubr.bf16.gmra.mrb[40].mxu1 %v1950_v31 }
  0xc9   : > { %574 = vmatprep.mubr.bf16.mxu0 %v1758_v0  ;;  %1504 = vmatprep.mubr.bf16.mxu1 %v1959_v39  ;;  %v2012_v0 = vrot.slane %v2005_v13, %v295_v14 }
  0xd0   : > { %575 = vmatmul.mubr.bf16.gmra.mrb[44].mxu0 %v250_v9  ;;  %1505 = vmatmul.mubr.bf16.gmra.mrb[44].mxu1 %v1968_v47 }
 0x14b   : > { %v466_v16 = vpop.f32.mrb[0].mxu0  ;;  %v586_v17 = vpop.f32.mrb[0].mxu1 }
 0x14c   : > { %v467_v18 = vadd.f32 %v466_v16, %v2009_v15  ;;  %v587_v19 = vadd.f32 %v586_v17, %v2009_v15  ;;  %v468_v20 = vpop.f32.mrb[1].mxu0  ;;  %v588_v21 = vpop.f32.mrb[1].mxu1 }
 0x14d   : > { %v469_v22 = vadd.f32 %v468_v20, %v2012_v0  ;;  %v589_v23 = vadd.f32 %v588_v21, %v2012_v0  ;;  %v470_v24 = vpop.f32.mrb[2].mxu0  ;;  %v590_v25 = vpop.f32.mrb[2].mxu1 }
 0x14e   : > { %v471_v26 = vadd.f32 %v470_v24, %v2009_v15  ;;  %v591_v27 = vadd.f32 %v590_v25, %v2009_v15  ;;  %v472_v28 = vpop.f32.mrb[3].mxu0  ;;  %v592_v29 = vpop.f32.mrb[3].mxu1 }
 0x14f   : > { %v1372_v30 = vpack.c.bf16 %v469_v22, %v467_v18  ;;  %v1420_v31 = vpack.c.bf16 %v589_v23, %v587_v19  ;;  %v473_v32 = vadd.f32 %v472_v28, %v2012_v0  ;;  %v593_v33 = vadd.f32 %v592_v29, %v2012_v0 }
 0x150   : > { %v299_v22 = vsub.s32 2, %v1999_v11 }
 0x151   : > { %1106 = vst [vmem:[%s2023_s25] sm:$0xff] %v1372_v30  ;;  %1154 = vst [vmem:[%s2023_s25 + $0x120] sm:$0xff] %v1420_v31  ;;  %v1374_v34 = vpack.c.bf16 %v473_v32, %v471_v26  ;;  %v1422_v35 = vpack.c.bf16 %v593_v33, %v591_v27 }
 0x153   : > { %1108 = vst [vmem:[%s2023_s25 + $0xc] sm:$0xff] %v1374_v34  ;;  %1156 = vst [vmem:[%s2023_s25 + $0x12c] sm:$0xff] %v1422_v35  ;;  %v476_v36 = vpop.f32.mrb[4].mxu0  ;;  %v596_v37 = vpop.f32.mrb[4].mxu1  ;;  %v2063_v34 = vrot.slane %v2005_v13, %v299_v22 }
 0x154   : > { %v477_v38 = vadd.f32 %v476_v36, %v2009_v15  ;;  %v597_v39 = vadd.f32 %v596_v37, %v2009_v15  ;;  %v478_v40 = vpop.f32.mrb[5].mxu0  ;;  %v598_v41 = vpop.f32.mrb[5].mxu1 }
 0x155   : > { %v479_v42 = vadd.f32 %v478_v40, %v2012_v0  ;;  %v599_v43 = vadd.f32 %v598_v41, %v2012_v0  ;;  %v480_v44 = vpop.f32.mrb[6].mxu0  ;;  %v600_v45 = vpop.f32.mrb[6].mxu1 }
 0x156   : > { %v481_v46 = vadd.f32 %v480_v44, %v2009_v15  ;;  %v601_v47 = vadd.f32 %v600_v45, %v2009_v15  ;;  %v482_v48 = vpop.f32.mrb[7].mxu0  ;;  %v602_v49 = vpop.f32.mrb[7].mxu1 }
 0x157   : > { %v1376_v50 = vpack.c.bf16 %v479_v42, %v477_v38  ;;  %v1424_v51 = vpack.c.bf16 %v599_v43, %v597_v39  ;;  %v483_v52 = vadd.f32 %v482_v48, %v2012_v0  ;;  %v603_v53 = vadd.f32 %v602_v49, %v2012_v0 }
 0x159   : > { %1110 = vst [vmem:[%s2023_s25 + $0x18] sm:$0xff] %v1376_v50  ;;  %1158 = vst [vmem:[%s2023_s25 + $0x138] sm:$0xff] %v1424_v51  ;;  %v1378_v54 = vpack.c.bf16 %v483_v52, %v481_v46  ;;  %v1426_v55 = vpack.c.bf16 %v603_v53, %v601_v47 }
 0x15b   : > { %1112 = vst [vmem:[%s2023_s25 + $0x24] sm:$0xff] %v1378_v54  ;;  %1160 = vst [vmem:[%s2023_s25 + $0x144] sm:$0xff] %v1426_v55  ;;  %v486_v56 = vpop.f32.mrb[8].mxu0  ;;  %v606_v57 = vpop.f32.mrb[8].mxu1 }
 0x15c   : > { %v487_v58 = vadd.f32 %v486_v56, %v2009_v15  ;;  %v607_v59 = vadd.f32 %v606_v57, %v2009_v15  ;;  %v488_v60 = vpop.f32.mrb[9].mxu0  ;;  %v608_v61 = vpop.f32.mrb[9].mxu1 }
 0x15d   : > { %v489_v62 = vadd.f32 %v488_v60, %v2012_v0  ;;  %v609_v63 = vadd.f32 %v608_v61, %v2012_v0  ;;  %v490_v1 = vpop.f32.mrb[10].mxu0  ;;  %v610_v2 = vpop.f32.mrb[10].mxu1 }
 0x15e   : > { %v491_v3 = vadd.f32 %v490_v1, %v2009_v15  ;;  %v611_v4 = vadd.f32 %v610_v2, %v2009_v15  ;;  %v492_v5 = vpop.f32.mrb[11].mxu0  ;;  %v612_v6 = vpop.f32.mrb[11].mxu1 }
 0x15f   : > { %v1380_v7 = vpack.c.bf16 %v489_v62, %v487_v58  ;;  %v1428_v8 = vpack.c.bf16 %v609_v63, %v607_v59  ;;  %v493_v9 = vadd.f32 %v492_v5, %v2012_v0  ;;  %v613_v10 = vadd.f32 %v612_v6, %v2012_v0 }
 0x161   : > { %1114 = vst [vmem:[%s2023_s25 + $0x30] sm:$0xff] %v1380_v7  ;;  %1162 = vst [vmem:[%s2023_s25 + $0x150] sm:$0xff] %v1428_v8  ;;  %v1382_v12 = vpack.c.bf16 %v493_v9, %v491_v3  ;;  %v1430_v14 = vpack.c.bf16 %v613_v10, %v611_v4 }
 0x163   : > { %1116 = vst [vmem:[%s2023_s25 + $0x3c] sm:$0xff] %v1382_v12  ;;  %1164 = vst [vmem:[%s2023_s25 + $0x15c] sm:$0xff] %v1430_v14  ;;  %v496_v16 = vpop.f32.mrb[12].mxu0  ;;  %v616_v17 = vpop.f32.mrb[12].mxu1 }
 0x164   : > { %v497_v18 = vadd.f32 %v496_v16, %v2009_v15  ;;  %v617_v19 = vadd.f32 %v616_v17, %v2009_v15  ;;  %v498_v20 = vpop.f32.mrb[13].mxu0  ;;  %v618_v21 = vpop.f32.mrb[13].mxu1 }
 0x165   : > { %v499_v23 = vadd.f32 %v498_v20, %v2012_v0  ;;  %v619_v24 = vadd.f32 %v618_v21, %v2012_v0  ;;  %v500_v25 = vpop.f32.mrb[14].mxu0  ;;  %v620_v26 = vpop.f32.mrb[14].mxu1 }
 0x166   : > { %v501_v27 = vadd.f32 %v500_v25, %v2009_v15  ;;  %v621_v28 = vadd.f32 %v620_v26, %v2009_v15  ;;  %v502_v29 = vpop.f32.mrb[15].mxu0  ;;  %v622_v30 = vpop.f32.mrb[15].mxu1 }
 0x167   : > { %v1384_v31 = vpack.c.bf16 %v499_v23, %v497_v18  ;;  %v1432_v32 = vpack.c.bf16 %v619_v24, %v617_v19  ;;  %v503_v33 = vadd.f32 %v502_v29, %v2012_v0  ;;  %v623_v11 = vadd.f32 %v622_v30, %v2012_v0 }
 0x169   : > { %1118 = vst [vmem:[%s2023_s25 + $0x48] sm:$0xff] %v1384_v31  ;;  %1166 = vst [vmem:[%s2023_s25 + $0x168] sm:$0xff] %v1432_v32  ;;  %v1386_v35 = vpack.c.bf16 %v503_v33, %v501_v27  ;;  %v1434_v36 = vpack.c.bf16 %v623_v11, %v621_v28 }
 0x16b   : > { %1120 = vst [vmem:[%s2023_s25 + $0x54] sm:$0xff] %v1386_v35  ;;  %1168 = vst [vmem:[%s2023_s25 + $0x174] sm:$0xff] %v1434_v36  ;;  %v506_v37 = vpop.f32.mrb[16].mxu0  ;;  %v1478_v38 = vpop.f32.mrb[16].mxu1 }
 0x16c   : > { %v507_v39 = vadd.f32 %v506_v37, %v2009_v15  ;;  %v668_v40 = vadd.f32 %v1478_v38, %v2063_v34  ;;  %v508_v41 = vpop.f32.mrb[17].mxu0  ;;  %v659_v42 = vpop.f32.mrb[17].mxu1 }
 0x16d   : > { %v509_v43 = vadd.f32 %v508_v41, %v2012_v0  ;;  %v660_v13 = vadd.f32 %v659_v42, %v2063_v34  ;;  %v510_v44 = vpop.f32.mrb[18].mxu0  ;;  %v1479_v45 = vpop.f32.mrb[18].mxu1 }
 0x16e   : > { %v1377_v46 = vpack.c.bf16 %v668_v40, %v668_v40  ;;  %v511_v47 = vadd.f32 %v510_v44, %v2009_v15  ;;  %v671_v48 = vadd.f32 %v1479_v45, %v2063_v34  ;;  %v512_v49 = vpop.f32.mrb[19].mxu0  ;;  %v662_v50 = vpop.f32.mrb[19].mxu1 }
 0x16f   : > { %v1388_v51 = vpack.c.bf16 %v509_v43, %v507_v39  ;;  %v1373_v52 = vpack.c.bf16 %v660_v13, %v660_v13  ;;  %v513_v53 = vadd.f32 %v512_v49, %v2012_v0  ;;  %v663_v54 = vadd.f32 %v662_v50, %v2063_v34 }
 0x170   : > { %1111 = vst [vmem:[%s2023_s25 + $0x20] sm:$0xf] %v1377_v46  ;;  %v1379_v55 = vpack.c.bf16 %v671_v48, %v671_v48 }
 0x171   : > { %1122 = vst [vmem:[%s2023_s25 + $0x60] sm:$0xff] %v1388_v51  ;;  %1107 = vst [vmem:[%s2023_s25 + $0x8] sm:$0xf] %v1373_v52  ;;  %v1390_v56 = vpack.c.bf16 %v513_v53, %v511_v47  ;;  %v1375_v57 = vpack.c.bf16 %v663_v54, %v663_v54 }
 0x172   : > { %1113 = vst [vmem:[%s2023_s25 + $0x2c] sm:$0xf] %v1379_v55 }
 0x173   : > { %1124 = vst [vmem:[%s2023_s25 + $0x6c] sm:$0xff] %v1390_v56  ;;  %1109 = vst [vmem:[%s2023_s25 + $0x14] sm:$0xf] %v1375_v57  ;;  %v516_v58 = vpop.f32.mrb[20].mxu0  ;;  %v1482_v59 = vpop.f32.mrb[20].mxu1 }
 0x174   : > { %v517_v60 = vadd.f32 %v516_v58, %v2009_v15  ;;  %v684_v61 = vadd.f32 %v1482_v59, %v2063_v34  ;;  %v518_v62 = vpop.f32.mrb[21].mxu0  ;;  %v675_v63 = vpop.f32.mrb[21].mxu1 }
 0x175   : > { %v519_v1 = vadd.f32 %v518_v62, %v2012_v0  ;;  %v676_v2 = vadd.f32 %v675_v63, %v2063_v34  ;;  %v520_v3 = vpop.f32.mrb[22].mxu0  ;;  %v1483_v4 = vpop.f32.mrb[22].mxu1 }
 0x176   : > { %v1385_v5 = vpack.c.bf16 %v684_v61, %v684_v61  ;;  %v521_v6 = vadd.f32 %v520_v3, %v2009_v15  ;;  %v687_v7 = vadd.f32 %v1483_v4, %v2063_v34  ;;  %v522_v8 = vpop.f32.mrb[23].mxu0  ;;  %v678_v9 = vpop.f32.mrb[23].mxu1 }
 0x177   : > { %v1392_v10 = vpack.c.bf16 %v519_v1, %v517_v60  ;;  %v1381_v12 = vpack.c.bf16 %v676_v2, %v676_v2  ;;  %v523_v14 = vadd.f32 %v522_v8, %v2012_v0  ;;  %v679_v16 = vadd.f32 %v678_v9, %v2063_v34 }
 0x178   : > { %1119 = vst [vmem:[%s2023_s25 + $0x50] sm:$0xf] %v1385_v5  ;;  %v1387_v17 = vpack.c.bf16 %v687_v7, %v687_v7 }
 0x179   : > { %1126 = vst [vmem:[%s2023_s25 + $0x78] sm:$0xff] %v1392_v10  ;;  %1115 = vst [vmem:[%s2023_s25 + $0x38] sm:$0xf] %v1381_v12  ;;  %v1394_v18 = vpack.c.bf16 %v523_v14, %v521_v6  ;;  %v1383_v19 = vpack.c.bf16 %v679_v16, %v679_v16 }
 0x17a   : > { %1121 = vst [vmem:[%s2023_s25 + $0x5c] sm:$0xf] %v1387_v17 }
 0x17b   : > { %1128 = vst [vmem:[%s2023_s25 + $0x84] sm:$0xff] %v1394_v18  ;;  %1117 = vst [vmem:[%s2023_s25 + $0x44] sm:$0xf] %v1383_v19  ;;  %v526_v20 = vpop.f32.mrb[24].mxu0  ;;  %v1486_v21 = vpop.f32.mrb[24].mxu1 }
 0x17c   : > { %v527_v22 = vadd.f32 %v526_v20, %v2009_v15  ;;  %v700_v23 = vadd.f32 %v1486_v21, %v2063_v34  ;;  %v528_v24 = vpop.f32.mrb[25].mxu0  ;;  %v691_v25 = vpop.f32.mrb[25].mxu1 }
 0x17d   : > { %v529_v26 = vadd.f32 %v528_v24, %v2012_v0  ;;  %v692_v27 = vadd.f32 %v691_v25, %v2063_v34  ;;  %v530_v28 = vpop.f32.mrb[26].mxu0  ;;  %v1487_v29 = vpop.f32.mrb[26].mxu1 }
 0x17e   : > { %v1393_v30 = vpack.c.bf16 %v700_v23, %v700_v23  ;;  %v531_v31 = vadd.f32 %v530_v28, %v2009_v15  ;;  %v703_v32 = vadd.f32 %v1487_v29, %v2063_v34  ;;  %v532_v33 = vpop.f32.mrb[27].mxu0  ;;  %v694_v11 = vpop.f32.mrb[27].mxu1 }
 0x17f   : > { %v1396_v35 = vpack.c.bf16 %v529_v26, %v527_v22  ;;  %v1389_v36 = vpack.c.bf16 %v692_v27, %v692_v27  ;;  %v533_v37 = vadd.f32 %v532_v33, %v2012_v0  ;;  %v695_v38 = vadd.f32 %v694_v11, %v2063_v34 }
 0x180   : > { %1127 = vst [vmem:[%s2023_s25 + $0x80] sm:$0xf] %v1393_v30  ;;  %v1395_v39 = vpack.c.bf16 %v703_v32, %v703_v32 }
 0x181   : > { %1130 = vst [vmem:[%s2023_s25 + $0x90] sm:$0xff] %v1396_v35  ;;  %1123 = vst [vmem:[%s2023_s25 + $0x68] sm:$0xf] %v1389_v36  ;;  %v1398_v40 = vpack.c.bf16 %v533_v37, %v531_v31  ;;  %v1391_v41 = vpack.c.bf16 %v695_v38, %v695_v38 }
 0x182   : > { %1129 = vst [vmem:[%s2023_s25 + $0x8c] sm:$0xf] %v1395_v39 }
 0x183   : > { %1132 = vst [vmem:[%s2023_s25 + $0x9c] sm:$0xff] %v1398_v40  ;;  %1125 = vst [vmem:[%s2023_s25 + $0x74] sm:$0xf] %v1391_v41  ;;  %v536_v42 = vpop.f32.mrb[28].mxu0  ;;  %v1490_v43 = vpop.f32.mrb[28].mxu1 }
 0x184   : > { %v537_v13 = vadd.f32 %v536_v42, %v2009_v15  ;;  %v716_v44 = vadd.f32 %v1490_v43, %v2063_v34  ;;  %v538_v45 = vpop.f32.mrb[29].mxu0  ;;  %v707_v46 = vpop.f32.mrb[29].mxu1 }
 0x185   : > { %v539_v47 = vadd.f32 %v538_v45, %v2012_v0  ;;  %v708_v48 = vadd.f32 %v707_v46, %v2063_v34  ;;  %v540_v49 = vpop.f32.mrb[30].mxu0  ;;  %v1491_v50 = vpop.f32.mrb[30].mxu1 }
 0x186   : > { %v1401_v51 = vpack.c.bf16 %v716_v44, %v716_v44  ;;  %v541_v52 = vadd.f32 %v540_v49, %v2009_v15  ;;  %v719_v53 = vadd.f32 %v1491_v50, %v2063_v34  ;;  %v542_v54 = vpop.f32.mrb[31].mxu0  ;;  %v710_v55 = vpop.f32.mrb[31].mxu1 }
 0x187   : > { %v1400_v56 = vpack.c.bf16 %v539_v47, %v537_v13  ;;  %v1397_v57 = vpack.c.bf16 %v708_v48, %v708_v48  ;;  %v543_v58 = vadd.f32 %v542_v54, %v2012_v0  ;;  %v711_v59 = vadd.f32 %v710_v55, %v2063_v34 }
 0x188   : > { %1135 = vst [vmem:[%s2023_s25 + $0xb0] sm:$0xf] %v1401_v51  ;;  %v1403_v60 = vpack.c.bf16 %v719_v53, %v719_v53 }
 0x189   : > { %1134 = vst [vmem:[%s2023_s25 + $0xa8] sm:$0xff] %v1400_v56  ;;  %1131 = vst [vmem:[%s2023_s25 + $0x98] sm:$0xf] %v1397_v57  ;;  %v1402_v61 = vpack.c.bf16 %v543_v58, %v541_v52  ;;  %v1399_v62 = vpack.c.bf16 %v711_v59, %v711_v59 }
 0x18a   : > { %1137 = vst [vmem:[%s2023_s25 + $0xbc] sm:$0xf] %v1403_v60 }
 0x18b   : > { %1136 = vst [vmem:[%s2023_s25 + $0xb4] sm:$0xff] %v1402_v61  ;;  %1133 = vst [vmem:[%s2023_s25 + $0xa4] sm:$0xf] %v1399_v62  ;;  %v546_v63 = vpop.f32.mrb[32].mxu0  ;;  %v1494_v1 = vpop.f32.mrb[32].mxu1 }
 0x18c   : > { %v547_v2 = vadd.f32 %v546_v63, %v2009_v15  ;;  %v732_v3 = vadd.f32 %v1494_v1, %v2063_v34  ;;  %v548_v4 = vpop.f32.mrb[33].mxu0  ;;  %v723_v5 = vpop.f32.mrb[33].mxu1 }
 0x18d   : > { %v549_v6 = vadd.f32 %v548_v4, %v2012_v0  ;;  %v724_v7 = vadd.f32 %v723_v5, %v2063_v34  ;;  %v550_v8 = vpop.f32.mrb[34].mxu0  ;;  %v1495_v9 = vpop.f32.mrb[34].mxu1 }
 0x18e   : > { %v1409_v10 = vpack.c.bf16 %v732_v3, %v732_v3  ;;  %v551_v12 = vadd.f32 %v550_v8, %v2009_v15  ;;  %v735_v14 = vadd.f32 %v1495_v9, %v2063_v34  ;;  %v552_v16 = vpop.f32.mrb[35].mxu0  ;;  %v726_v17 = vpop.f32.mrb[35].mxu1 }
 0x18f   : > { %v1404_v18 = vpack.c.bf16 %v549_v6, %v547_v2  ;;  %v1405_v19 = vpack.c.bf16 %v724_v7, %v724_v7  ;;  %v553_v20 = vadd.f32 %v552_v16, %v2012_v0  ;;  %v727_v21 = vadd.f32 %v726_v17, %v2063_v34 }
 0x190   : > { %1143 = vst [vmem:[%s2023_s25 + $0xe0] sm:$0xf] %v1409_v10  ;;  %v1411_v22 = vpack.c.bf16 %v735_v14, %v735_v14 }
 0x191   : > { %1138 = vst [vmem:[%s2023_s25 + $0xc0] sm:$0xff] %v1404_v18  ;;  %1139 = vst [vmem:[%s2023_s25 + $0xc8] sm:$0xf] %v1405_v19  ;;  %v1406_v23 = vpack.c.bf16 %v553_v20, %v551_v12  ;;  %v1407_v24 = vpack.c.bf16 %v727_v21, %v727_v21 }
 0x192   : > { %1145 = vst [vmem:[%s2023_s25 + $0xec] sm:$0xf] %v1411_v22 }
 0x193   : > { %1140 = vst [vmem:[%s2023_s25 + $0xcc] sm:$0xff] %v1406_v23  ;;  %1141 = vst [vmem:[%s2023_s25 + $0xd4] sm:$0xf] %v1407_v24  ;;  %v556_v25 = vpop.f32.mrb[36].mxu0  ;;  %v1498_v26 = vpop.f32.mrb[36].mxu1 }
 0x194   : > { %v557_v27 = vadd.f32 %v556_v25, %v2009_v15  ;;  %v748_v28 = vadd.f32 %v1498_v26, %v2063_v34  ;;  %v558_v29 = vpop.f32.mrb[37].mxu0  ;;  %v739_v30 = vpop.f32.mrb[37].mxu1 }
 0x195   : > { %v559_v31 = vadd.f32 %v558_v29, %v2012_v0  ;;  %v740_v32 = vadd.f32 %v739_v30, %v2063_v34  ;;  %v560_v33 = vpop.f32.mrb[38].mxu0  ;;  %v1499_v11 = vpop.f32.mrb[38].mxu1 }
 0x196   : > { %v1417_v35 = vpack.c.bf16 %v748_v28, %v748_v28  ;;  %v561_v36 = vadd.f32 %v560_v33, %v2009_v15  ;;  %v751_v37 = vadd.f32 %v1499_v11, %v2063_v34  ;;  %v562_v38 = vpop.f32.mrb[39].mxu0  ;;  %v742_v39 = vpop.f32.mrb[39].mxu1 }
 0x197   : > { %v1408_v40 = vpack.c.bf16 %v559_v31, %v557_v27  ;;  %v1413_v41 = vpack.c.bf16 %v740_v32, %v740_v32  ;;  %v563_v42 = vadd.f32 %v562_v38, %v2012_v0  ;;  %v743_v43 = vadd.f32 %v742_v39, %v2063_v34 }
 0x198   : > { %1151 = vst [vmem:[%s2023_s25 + $0x110] sm:$0xf] %v1417_v35  ;;  %v1419_v13 = vpack.c.bf16 %v751_v37, %v751_v37 }
 0x199   : > { %1142 = vst [vmem:[%s2023_s25 + $0xd8] sm:$0xff] %v1408_v40  ;;  %1147 = vst [vmem:[%s2023_s25 + $0xf8] sm:$0xf] %v1413_v41  ;;  %v1410_v44 = vpack.c.bf16 %v563_v42, %v561_v36  ;;  %v1415_v45 = vpack.c.bf16 %v743_v43, %v743_v43 }
 0x19a   : > { %1153 = vst [vmem:[%s2023_s25 + $0x11c] sm:$0xf] %v1419_v13 }
 0x19b   : > { %1144 = vst [vmem:[%s2023_s25 + $0xe4] sm:$0xff] %v1410_v44  ;;  %1149 = vst [vmem:[%s2023_s25 + $0x104] sm:$0xf] %v1415_v45  ;;  %v566_v46 = vpop.f32.mrb[40].mxu0  ;;  %v1502_v47 = vpop.f32.mrb[40].mxu1 }
 0x19c   : > { %v567_v48 = vadd.f32 %v566_v46, %v2009_v15  ;;  %v764_v49 = vadd.f32 %v1502_v47, %v2063_v34  ;;  %v568_v50 = vpop.f32.mrb[41].mxu0  ;;  %v755_v51 = vpop.f32.mrb[41].mxu1 }
 0x19d   : > { %v569_v52 = vadd.f32 %v568_v50, %v2012_v0  ;;  %v756_v53 = vadd.f32 %v755_v51, %v2063_v34  ;;  %v570_v54 = vpop.f32.mrb[42].mxu0  ;;  %v1503_v55 = vpop.f32.mrb[42].mxu1 }
 0x19e   : > { %v1425_v56 = vpack.c.bf16 %v764_v49, %v764_v49  ;;  %v571_v57 = vadd.f32 %v570_v54, %v2009_v15  ;;  %v767_v58 = vadd.f32 %v1503_v55, %v2063_v34  ;;  %v572_v59 = vpop.f32.mrb[43].mxu0  ;;  %v758_v60 = vpop.f32.mrb[43].mxu1 }
 0x19f   : > { %v1412_v61 = vpack.c.bf16 %v569_v52, %v567_v48  ;;  %v1421_v62 = vpack.c.bf16 %v756_v53, %v756_v53  ;;  %v573_v63 = vadd.f32 %v572_v59, %v2012_v0  ;;  %v759_v1 = vadd.f32 %v758_v60, %v2063_v34 }
 0x1a0   : > { %1159 = vst [vmem:[%s2023_s25 + $0x140] sm:$0xf] %v1425_v56  ;;  %v1427_v2 = vpack.c.bf16 %v767_v58, %v767_v58 }
 0x1a1   : > { %1146 = vst [vmem:[%s2023_s25 + $0xf0] sm:$0xff] %v1412_v61  ;;  %1155 = vst [vmem:[%s2023_s25 + $0x128] sm:$0xf] %v1421_v62  ;;  %v1414_v3 = vpack.c.bf16 %v573_v63, %v571_v57  ;;  %v1423_v4 = vpack.c.bf16 %v759_v1, %v759_v1 }
 0x1a2   : > { %1161 = vst [vmem:[%s2023_s25 + $0x14c] sm:$0xf] %v1427_v2 }
 0x1a3   : > { %1148 = vst [vmem:[%s2023_s25 + $0xfc] sm:$0xff] %v1414_v3  ;;  %1157 = vst [vmem:[%s2023_s25 + $0x134] sm:$0xf] %v1423_v4  ;;  %v576_v5 = vpop.f32.mrb[44].mxu0  ;;  %v1506_v6 = vpop.f32.mrb[44].mxu1 }
 0x1a4   : > { %v577_v7 = vadd.f32 %v576_v5, %v2009_v15  ;;  %v780_v8 = vadd.f32 %v1506_v6, %v2063_v34  ;;  %v578_v9 = vpop.f32.mrb[45].mxu0  ;;  %v771_v10 = vpop.f32.mrb[45].mxu1 }
 0x1a5   : > { %v579_v12 = vadd.f32 %v578_v9, %v2012_v0  ;;  %v772_v14 = vadd.f32 %v771_v10, %v2063_v34  ;;  %v580_v16 = vpop.f32.mrb[46].mxu0  ;;  %v1507_v17 = vpop.f32.mrb[46].mxu1 }
 0x1a6   : > { %v1433_v18 = vpack.c.bf16 %v780_v8, %v780_v8  ;;  %v581_v19 = vadd.f32 %v580_v16, %v2009_v15  ;;  %v783_v20 = vadd.f32 %v1507_v17, %v2063_v34  ;;  %v582_v21 = vpop.f32.mrb[47].mxu0  ;;  %v774_v22 = vpop.f32.mrb[47].mxu1 }
 0x1a7   : > { %v1416_v23 = vpack.c.bf16 %v579_v12, %v577_v7  ;;  %v1429_v24 = vpack.c.bf16 %v772_v14, %v772_v14  ;;  %v583_v25 = vadd.f32 %v582_v21, %v2012_v0  ;;  %v775_v26 = vadd.f32 %v774_v22, %v2063_v34 }
 0x1a8   : > { %1167 = vst [vmem:[%s2023_s25 + $0x170] sm:$0xf] %v1433_v18  ;;  %v1435_v27 = vpack.c.bf16 %v783_v20, %v783_v20 }
 0x1a9   : > { %1150 = vst [vmem:[%s2023_s25 + $0x108] sm:$0xff] %v1416_v23  ;;  %1163 = vst [vmem:[%s2023_s25 + $0x158] sm:$0xf] %v1429_v24  ;;  %v1418_v15 = vpack.c.bf16 %v583_v25, %v581_v19  ;;  %v1431_v28 = vpack.c.bf16 %v775_v26, %v775_v26 }
 0x1aa   : > { %1169 = vst [vmem:[%s2023_s25 + $0x17c] sm:$0xf] %v1435_v27 }
 0x1ab   : > { %1152 = vst [vmem:[%s2023_s25 + $0x114] sm:$0xff] %v1418_v15  ;;  %1165 = vst [vmem:[%s2023_s25 + $0x164] sm:$0xf] %v1431_v28 }
 0x1ac   : > { %1693 = shalt.err (!%p1690_p7)
}
 0x1ad   : > { %s1694_s22 = scalar_lea.hbm %s2181_s11, 6144  ;;  %s1698_s9 = scalar_lea.hbm %s2235_s3, 12288 }
 0x1ae   : > { %p1695_p9 = scmp.ne.s32.totalorder %s2181_s11, %s1694_s22  ;;  %p1699_p5 = scmp.lt.u32.totalorder %s2181_s11, %s2235_s3 }
 0x1af   : > { %p1700_p11 = scmp.lt.u32.totalorder %s1698_s9, %s1694_s22  ;;  %p1702_p4 = scmp.lt.u32.totalorder %s1694_s22, %s2181_s11 }
 0x1b0   : > { %p1696_p2 = pnand %p1695_p9, %p1873_p12 }
 0x1b1   : > { %p1701_p1 = por %p1700_p11, %p1699_p5 }
 0x1b2   : > { %p1697_p0 = pneg %p1696_p2 }
 0x1b3   : > { %p1703_p6 = por %p1702_p4, %p1701_p1 }
 0x1b5   : > { %p1704_p8 = pnand %p1703_p6, %p1697_p0 }
 0x1b7   : > { %1707 = shalt.err (!%p1704_p8)
}
 0x1b8   : > { %s1760_s4 = smov 192   ;;  %s1761_s25 = smov 12  }
 0x1b9   : > { %1532 = dma.vmem_to_hbm [thread:$0]  (%p1873_p12), %s2183_s5, 6144, %s2181_s11, %s1171_s27, %s1760_s4, %s1760_s4, %s1761_s25  }
 0x1ba PF: > { %s1200_s26 = sand.u32 1, %s1738_s12   ;;  %p2250_p10 = scmp.ne.s32.totalorder %s2240_s19, 0 }
 0x1bb   : > { %p2251_p13 = scmp.ge.s32.totalorder %s1750_s15, 2  ;;  %s1201_s16 = scalar_lea.sflag [#allocation4], %s1200_s26 }
 0x1bd   : > { %p1543_p3 = pnand %p2251_p13, %p2250_p10 }
 0x1bf   : > { %1733 = dma.done.wait (!%p1543_p3), %s1201_s16, 6144  }
 0x1c0   : > { %1735 = vsyncadd (!%p1543_p3), %s1201_s16, 4294961152  ;;  %p17_p7 = scmp.ge.s32.totalorder %s1838_s24, 4   ;;  %s2252_s12 = smov %s1742_s13 }
 0x1c1   : > { %s2253_s13 = smov %s1746_s14  ;;  %s2254_s14 = smov %s1869_s17 }
 0x1c2   : > { %s2255_s15 = smov %s1838_s24  ;;  %19 = sbr.rel (!%p17_p7) target bundleno = 6 (0x6), region = 81 }
 0x1c9   :  { %1206 = vsyncpa [#allocation3], 1 }
 0x1ca   :  { %1208 = vsyncpa [#allocation3 + $0x1], 1 }
 0x1cb   :  { %1209 = vsyncpa [#allocation6], 1 }
 0x1cc   :  { %1210 = vsyncpa [#allocation4], 1 }
 0x1cd   :  { %1212 = vsyncpa [#allocation4 + $0x1], 1 }

</bundles_post_ra>
